<compile_context>
chip_gen: v5e
topology: v5e:2x2
jax: 0.10.0
libtpu: 0.0.40
codegen_flags: <defaults>
</compile_context>

<pallas_src>
import functools

import jax
import jax.numpy as jnp
from jax import lax
from jax.experimental import pallas as pl
from jax.experimental.pallas import tpu as pltpu


def _self_training_kernel(y_ref, yt_ref, wce_ref, mask_ref, plab_ref,
                          *, threshold: float):
    y = y_ref[...].astype(jnp.float32)        # (T, C) logits for the loss
    yt = yt_ref[...].astype(jnp.float32)      # (T, C) logits for pseudo-labels
    t, c = y.shape

    col_idx = lax.broadcasted_iota(jnp.int32, (t, c), 1)             # (T,C)

    # ---- pseudo labels + confidence mask from y_target --------------------
    yt_max = jnp.max(yt, axis=1, keepdims=True)                      # (T,1)
    sum_e_t = jnp.sum(jnp.exp(yt - yt_max), axis=1, keepdims=True)   # (T,1)
    # confidence = max(softmax(yt)) = 1 / sum_e_t
    #   confidence > threshold  <=>  threshold * sum_e_t < 1
    mask = (sum_e_t * jnp.float32(threshold) < 1.0).astype(jnp.float32)  # (T,1)

    # argmax along classes; first maximal index (matches argmax tie-break).
    is_max = yt == yt_max
    pseudo = jnp.min(jnp.where(is_max, col_idx, c), axis=1, keepdims=True)  # (T,1)

    # ---- cross_entropy(y, pseudo, reduction='none') ------------------------
    #   ce = logsumexp(y) - y[i, pseudo[i]]  (the row max cancels)
    y_shift = y - jnp.max(y, axis=1, keepdims=True)                  # (T,C)
    lse = jnp.log(jnp.sum(jnp.exp(y_shift), axis=1, keepdims=True))  # (T,1)
    picked = jnp.sum(jnp.where(col_idx == pseudo, y_shift, 0.0),
                     axis=1, keepdims=True)                          # (T,1)
    ce = lse - picked                                                # (T,1)

    # Per-row partials; the scalar mean is computed in the wrapper.
    wce_ref[...] = ce * mask
    mask_ref[...] = mask
    plab_ref[...] = pseudo


def confidence_regularized_self_training_loss(y, y_target, threshold: float,
                                              *, block_rows: int | None = None):
    """Returns (self_training_loss scalar, mask (N,), pseudo_labels (N,) int32)."""
    n, c = y.shape
    assert y_target.shape == (n, c)

    if block_rows is None:
        # Keep each (block_rows, C) f32 input block <= ~2 MiB so that
        # 2 inputs x 2 pipeline buffers + compute temporaries stay well under
        # the 48 MiB VMEM limit we request (safe on v5e/v6e/v7x).
        budget_rows = max(8, ((2 * 1024 * 1024) // (4 * c)) // 8 * 8)
        block_rows = min(1024, budget_rows)
    else:
        block_rows = max(8, (block_rows // 8) * 8)
    if n <= block_rows:
        block_rows = n          # single full-extent block (always legal)
    grid = (pl.cdiv(n, block_rows),)

    kernel = functools.partial(_self_training_kernel, threshold=float(threshold))

    wce, mask, plab = pl.pallas_call(
        kernel,
        out_shape=(
            jax.ShapeDtypeStruct((n, 1), jnp.float32),   # ce * mask per row
            jax.ShapeDtypeStruct((n, 1), jnp.float32),   # mask per row
            jax.ShapeDtypeStruct((n, 1), jnp.int32),     # pseudo label per row
        ),
        grid=grid,
        in_specs=[
            pl.BlockSpec((block_rows, c), lambda i: (i, 0)),
            pl.BlockSpec((block_rows, c), lambda i: (i, 0)),
        ],
        out_specs=(
            pl.BlockSpec((block_rows, 1), lambda i: (i, 0)),
            pl.BlockSpec((block_rows, 1), lambda i: (i, 0)),
            pl.BlockSpec((block_rows, 1), lambda i: (i, 0)),
        ),
        compiler_params=pltpu.CompilerParams(
            dimension_semantics=("parallel",),
            vmem_limit_bytes=48 * 1024 * 1024,
        ),
    )(y, y_target)

    # Final reduction in the wrapper: mean over the *full* batch (matches
    # F.cross_entropy(...)*mask followed by .mean()).
    loss = jnp.sum(wce[:, 0]) / jnp.float32(n)
    return loss, mask[:, 0], plab[:, 0]


def _reference(y, y_target, threshold):
    probs = jax.nn.softmax(y_target, axis=1)
    confidence = jnp.max(probs, axis=1)
    pseudo = jnp.argmax(y_target, axis=1).astype(jnp.int32)
    mask = (confidence > threshold).astype(jnp.float32)
    logp = jax.nn.log_softmax(y, axis=1)
    ce = -jnp.take_along_axis(logp, pseudo[:, None], axis=1)[:, 0]
    return jnp.mean(ce * mask), mask, pseudo


if __name__ == "__main__":
    key = jax.random.PRNGKey(0)
    k1, k2, k3, k4 = jax.random.split(key, 4)
    threshold = 0.5

    # Case 1: small single-block case.
    y1 = jax.random.normal(k1, (8, 32), dtype=jnp.float32) * 2.0
    t1 = jax.random.normal(k2, (8, 32), dtype=jnp.float32) * 2.0
    loss1, mask1, pseudo1 = confidence_regularized_self_training_loss(y1, t1, threshold)
    jax.block_until_ready((loss1, mask1, pseudo1))
    rl1, rm1, rp1 = _reference(y1, t1, threshold)
    assert jnp.allclose(loss1, rl1, atol=1e-6, rtol=1e-4), (loss1, rl1)
    assert jnp.array_equal(mask1, rm1)
    assert jnp.array_equal(pseudo1, rp1)

    # Case 2: multi-tile grid with a ragged last block (exercises the
    # pipelined grid path and edge masking).
    y2 = jax.random.normal(k3, (300, 40), dtype=jnp.float32) * 3.0
    t2 = jax.random.normal(k4, (300, 40), dtype=jnp.float32) * 3.0
    loss2, mask2, pseudo2 = confidence_regularized_self_training_loss(
        y2, t2, threshold, block_rows=128)
    jax.block_until_ready((loss2, mask2, pseudo2))
    rl2, rm2, rp2 = _reference(y2, t2, threshold)
    assert jnp.allclose(loss2, rl2, atol=1e-6, rtol=1e-4), (loss2, rl2)
    assert jnp.array_equal(mask2, rm2)
    assert jnp.array_equal(pseudo2, rp2)

    print("KERNEL_OK")
</pallas_src>

<mosaic_0001>
module attributes {stable_mosaic.version = 11 : i64} {
  func.func @_self_training_kernel(%arg0: i32, %arg1: memref<8x32xf32, #tpu.memory_space<vmem>>, %arg2: memref<8x32xf32, #tpu.memory_space<vmem>>, %arg3: memref<8x1xf32, #tpu.memory_space<vmem>>, %arg4: memref<8x1xf32, #tpu.memory_space<vmem>>, %arg5: memref<8x1xi32, #tpu.memory_space<vmem>>) attributes {dimension_semantics = [#tpu.dimension_semantics<parallel>], iteration_bounds = array<i64: 1>, scalar_prefetch = 0 : i64, scratch_operands = 0 : i64, tpu.core_type = #tpu.core_type<tc>, window_params = [{transform_indices = @transform_0, window_bounds = array<i64: 8, 32>}, {transform_indices = @transform_1, window_bounds = array<i64: 8, 32>}, {transform_indices = @transform_2, window_bounds = array<i64: 8, 1>}, {transform_indices = @transform_3, window_bounds = array<i64: 8, 1>}, {transform_indices = @transform_4, window_bounds = array<i64: 8, 1>}]} {
    %c0 = arith.constant 0 : index
    %c0_0 = arith.constant 0 : index
    %0 = vector.load %arg1[%c0, %c0_0] : memref<8x32xf32, #tpu.memory_space<vmem>>, vector<8x32xf32>
    %c0_1 = arith.constant 0 : index
    %c0_2 = arith.constant 0 : index
    %1 = vector.load %arg2[%c0_1, %c0_2] : memref<8x32xf32, #tpu.memory_space<vmem>>, vector<8x32xf32>
    %2 = tpu.iota {dimensions = array<i32: 1>} : vector<8x32xi32>
    %cst = arith.constant dense<0xFF800000> : vector<8xf32>
    %3 = vector.multi_reduction <maximumf>, %1, %cst [1] : vector<8x32xf32> to vector<8xf32>
    %4 = vector.shape_cast %3 : vector<8xf32> to vector<8x1xf32>
    %5 = vector.broadcast %4 : vector<8x1xf32> to vector<8x32xf32>
    %6 = arith.subf %1, %5 : vector<8x32xf32>
    %7 = math.exp %6 : vector<8x32xf32>
    %cst_3 = arith.constant dense<0.000000e+00> : vector<8xf32>
    %8 = vector.multi_reduction <add>, %7, %cst_3 [1] : vector<8x32xf32> to vector<8xf32>
    %9 = vector.shape_cast %8 : vector<8xf32> to vector<8x1xf32>
    %cst_4 = arith.constant 5.000000e-01 : f32
    %10 = vector.broadcast %cst_4 : f32 to vector<8x1xf32>
    %11 = arith.mulf %9, %10 : vector<8x1xf32>
    %cst_5 = arith.constant 1.000000e+00 : f32
    %12 = vector.broadcast %cst_5 : f32 to vector<8x1xf32>
    %13 = arith.cmpf olt, %11, %12 : vector<8x1xf32>
    %14 = arith.extui %13 : vector<8x1xi1> to vector<8x1xi32>
    %15 = arith.sitofp %14 : vector<8x1xi32> to vector<8x1xf32>
    %16 = vector.broadcast %4 : vector<8x1xf32> to vector<8x32xf32>
    %17 = arith.cmpf oeq, %1, %16 : vector<8x32xf32>
    %c32_i32 = arith.constant 32 : i32
    %18 = vector.broadcast %c32_i32 : i32 to vector<8x32xi32>
    %19 = arith.select %17, %2, %18 : vector<8x32xi1>, vector<8x32xi32>
    %cst_6 = arith.constant dense<2147483647> : vector<8xi32>
    %20 = vector.multi_reduction <minsi>, %19, %cst_6 [1] : vector<8x32xi32> to vector<8xi32>
    %21 = vector.shape_cast %20 : vector<8xi32> to vector<8x1xi32>
    %cst_7 = arith.constant dense<0xFF800000> : vector<8xf32>
    %22 = vector.multi_reduction <maximumf>, %0, %cst_7 [1] : vector<8x32xf32> to vector<8xf32>
    %23 = vector.shape_cast %22 : vector<8xf32> to vector<8x1xf32>
    %24 = vector.broadcast %23 : vector<8x1xf32> to vector<8x32xf32>
    %25 = arith.subf %0, %24 : vector<8x32xf32>
    %26 = math.exp %25 : vector<8x32xf32>
    %cst_8 = arith.constant dense<0.000000e+00> : vector<8xf32>
    %27 = vector.multi_reduction <add>, %26, %cst_8 [1] : vector<8x32xf32> to vector<8xf32>
    %28 = vector.shape_cast %27 : vector<8xf32> to vector<8x1xf32>
    %29 = math.log %28 : vector<8x1xf32>
    %30 = vector.broadcast %21 : vector<8x1xi32> to vector<8x32xi32>
    %31 = arith.cmpi eq, %2, %30 : vector<8x32xi32>
    %cst_9 = arith.constant 0.000000e+00 : f32
    %32 = vector.broadcast %cst_9 : f32 to vector<8x32xf32>
    %33 = arith.select %31, %25, %32 : vector<8x32xi1>, vector<8x32xf32>
    %cst_10 = arith.constant dense<0.000000e+00> : vector<8xf32>
    %34 = vector.multi_reduction <add>, %33, %cst_10 [1] : vector<8x32xf32> to vector<8xf32>
    %35 = vector.shape_cast %34 : vector<8xf32> to vector<8x1xf32>
    %36 = arith.subf %29, %35 : vector<8x1xf32>
    %37 = arith.mulf %36, %15 : vector<8x1xf32>
    %c0_11 = arith.constant 0 : index
    %c0_12 = arith.constant 0 : index
    %38 = vector.load %arg3[%c0_11, %c0_12] : memref<8x1xf32, #tpu.memory_space<vmem>>, vector<8x1xf32>
    tpu.vector_store %arg3[%c0_11, %c0_12], %37 {strides = array<i32>} : memref<8x1xf32, #tpu.memory_space<vmem>>, vector<8x1xf32>,
    %c0_13 = arith.constant 0 : index
    %c0_14 = arith.constant 0 : index
    %39 = vector.load %arg4[%c0_13, %c0_14] : memref<8x1xf32, #tpu.memory_space<vmem>>, vector<8x1xf32>
    tpu.vector_store %arg4[%c0_13, %c0_14], %15 {strides = array<i32>} : memref<8x1xf32, #tpu.memory_space<vmem>>, vector<8x1xf32>,
    %c0_15 = arith.constant 0 : index
    %c0_16 = arith.constant 0 : index
    %40 = vector.load %arg5[%c0_15, %c0_16] : memref<8x1xi32, #tpu.memory_space<vmem>>, vector<8x1xi32>
    tpu.vector_store %arg5[%c0_15, %c0_16], %21 {strides = array<i32>} : memref<8x1xi32, #tpu.memory_space<vmem>>, vector<8x1xi32>,
    return
  }
  func.func @transform_0(%arg0: i32) -> (i32, i32) {
    %c0_i32 = arith.constant 0 : i32
    %c0_i32_0 = arith.constant 0 : i32
    return %arg0, %c0_i32 : i32, i32
  }
  func.func @transform_1(%arg0: i32) -> (i32, i32) {
    %c0_i32 = arith.constant 0 : i32
    %c0_i32_0 = arith.constant 0 : i32
    return %arg0, %c0_i32 : i32, i32
  }
  func.func @transform_2(%arg0: i32) -> (i32, i32) {
    %c0_i32 = arith.constant 0 : i32
    %c0_i32_0 = arith.constant 0 : i32
    return %arg0, %c0_i32 : i32, i32
  }
  func.func @transform_3(%arg0: i32) -> (i32, i32) {
    %c0_i32 = arith.constant 0 : i32
    %c0_i32_0 = arith.constant 0 : i32
    return %arg0, %c0_i32 : i32, i32
  }
  func.func @transform_4(%arg0: i32) -> (i32, i32) {
    %c0_i32 = arith.constant 0 : i32
    %c0_i32_0 = arith.constant 0 : i32
    return %arg0, %c0_i32 : i32, i32
  }
}

</mosaic_0001>

<bundles_post_ra>
// kernel: tpu_custom_call.1
= control target key start
LH: loop header
LB: loop body
LE: loop exit
PB: predicated region body
PF: predicated region fallthrough
CT: control target
= control target key end

     0   :  { %10 = vsyncpa [#allocation3], 0  ;;  %s227_s0 = inlined_call_operand.hbm [shape: f32[8,32], index: 0, kind: input, shape index: {}]   ;;  %s228_s1 = inlined_call_operand.hbm [shape: f32[8,32], index: 1, kind: input, shape index: {}]   ;;  %s229_s2 = inlined_call_operand.vmem [shape: f32[8,1], index: 2, kind: output, shape index: {0}]   ;;  %s230_s3 = inlined_call_operand.vmem [shape: f32[8,1], index: 3, kind: output, shape index: {1}]   ;;  %s231_s4 = inlined_call_operand.vmem [shape: s32[8,1], index: 4, kind: output, shape index: {2}]  }
   0x1   :  { %s17_s17 = sshll.u32 %s227_s0, 4  ;;  %s18_s17 = int_to_ptr.hbm [resolvable:$true] %s17_s17 }
   0x2   :  { %11 = vsyncpa [#allocation5], 0  ;;  %s175_s18 = smov [#allocation2]   ;;  %s28_s22 = sshll.u32 %s228_s1, 4  ;;  %s29_s22 = int_to_ptr.hbm [resolvable:$true] %s28_s22 }
   0x3   :  { %s19_s19 = sshll.u32 %s175_s18, 4  ;;  %s176_s23 = smov [#allocation4]   ;;  %s20_s19 = int_to_ptr.vmem [resolvable:$true] %s19_s19 }
   0x4   :  { %22 = dma.hbm_to_vmem [thread:$0]  %s18_s17, 128, %s20_s19, [#allocation3]  }
   0x5   :  { %s30_s24 = sshll.u32 %s176_s23, 4  ;;  %s31_s24 = int_to_ptr.vmem [resolvable:$true] %s30_s24 }
   0x6   :  { %33 = dma.hbm_to_vmem [thread:$0]  %s29_s22, 128, %s31_s24, [#allocation5]  }
   0x7   :  { %171 = dma.done.wait [#allocation3], 128  }
   0x8   :  { %172 = vsyncadd [#allocation3], 4294967168 }
   0x9   :  { %173 = dma.done.wait [#allocation5], 128  }
   0xa   :  { %174 = vsyncadd [#allocation5], 4294967168  ;;  %vm46_vm0 = vcmask 261120   ;;  %v43_v0 = vld [vmem:[#allocation4] sm:$0xff]  ;;  %v42_v1 = vld [vmem:[#allocation2] sm:$0xff]  ;;  %v44_v4 = vlaneseq  ;;  %vm95_vm3 = vcmask 7168  }
   0xb   :  { %v47_v2 = vsel %vm46_vm0, %v43_v0, -inf  ;;  %v77_v3 = vsel %vm46_vm0, %v42_v1, -inf  ;;  %v177_v27 = vmov 0.0  }
   0xc   :  { %48 = vmax.xlane.f32.xlu0 %v47_v2  ;;  %78 = vmax.xlane.f32.xlu1 %v77_v3  ;;  %v45_v5 = vand.u32 127, %v44_v4 }
  0x7f   :  { %v49_v6 = vpop.xlane.xlu0 %48  ;;  %v79_v7 = vpop.xlane.xlu1 %78 }
  0x80   :  { %vm60_vm1 = vcmp.eq.f32.partialorder %v43_v0, %v49_v6  ;;  %v80_v8 = vsub.f32 %v42_v1, %v79_v7  ;;  %v50_v12 = vsub.f32 %v43_v0, %v49_v6 }
  0x81   :  { %v61_v9 = vsel %vm60_vm1, %v45_v5, 32 }
  0x82   :  { %v81_v10 = vmul.f32 1.442695, %v80_v8  ;;  %v62_v11 = vsel %vm46_vm0, %v61_v9, 2147483647  ;;  %v51_v15 = vmul.f32 1.442695, %v50_v12 }
  0x83   :  { %v64_v13 = vshra.s32 %v62_v11, 16  ;;  %v63_v20 = vand.u32 65535, %v62_v11 }
  0x84   :  { %117 = vpow2.f32 %v81_v10 }
  0x85   :  { %v66_v14 = vcvt.s32.f32 %v64_v13  ;;  %119 = vpow2.f32 %v51_v15  ;;  %v65_v22 = vcvt.s32.f32 %v63_v20 }
  0x87   :  { %67 = vmin.xlane.f32.xlu0 %v66_v14 }
  0x8a   :  { %v118_v16 = vpop.eup %117 }
  0x8b   :  { %v83_v17 = vsel %vm46_vm0, %v118_v16, 0.0  ;;  %v120_v18 = vpop.eup %119 }
  0x8c   :  { %84 = vadd.xlane.f32.xlu2 %v83_v17  ;;  %v53_v19 = vsel %vm46_vm0, %v120_v18, 0.0 }
  0x94   :  { %54 = vadd.xlane.f32.xlu2 %v53_v19 }
  0xfa   :  { %v68_v21 = vpop.xlane.xlu0 %67 }
  0xfb   :  { %vm69_vm2 = vcmp.eq.f32.partialorder %v66_v14, %v68_v21  ;;  %v74_v29 = vcvt.f32.s32 %v68_v21 }
  0xfc   :  { %v70_v23 = vsel %vm69_vm2, %v65_v22, inf }
  0xfd   :  { %71 = vmin.xlane.f32.xlu1 %v70_v23  ;;  %v75_v31 = vshll.u32 %v74_v29, 16 }
  0xff   :  { %v85_v24 = vpop.xlane.xlu2 %84 }
 0x100   :  { %121 = vlog2.f32 %v85_v24 }
 0x106   :  { %v122_v36 = vpop.eup %121 }
 0x107   :  { %v55_v25 = vpop.xlane.xlu2 %54  ;;  %v87_v37 = vmul.f32 0.6931472, %v122_v36 }
 0x108   :  { %v56_v26 = vmul.f32 0.5, %v55_v25 }
 0x10a   :  { %vm57_vm4 = vcmp.lt.f32.partialorder %v56_v26, 1.0 }
 0x10b   :  { %v113_v28 = vsel %vm57_vm4, 1.0, %v177_v27 }
 0x10c   :  { %97 = vst.msk [vmem:[%s230_s3] sm:$0xff] %vm95_vm3, %v113_v28 }
 0x170   :  { %v72_v30 = vpop.xlane.xlu1 %71 }
 0x171   :  { %v73_v32 = vcvt.f32.s32 %v72_v30 }
 0x173   :  { %v76_v33 = vadd.s32 %v75_v31, %v73_v32 }
 0x175   :  { %98 = vst.msk [vmem:[%s231_s4] sm:$0xff] %vm95_vm3, %v76_v33  ;;  %vm88_vm5 = vcmp.eq.s32.totalorder %v45_v5, %v76_v33 }
 0x176   :  { %v89_v34 = vsel %vm88_vm5, %v80_v8, 0.0 }
 0x177   :  { %v90_v35 = vsel %vm46_vm0, %v89_v34, 0.0 }
 0x178   :  { %91 = vadd.xlane.f32.xlu0 %v90_v35 }
 0x1eb   :  { %v92_v38 = vpop.xlane.xlu0 %91 }
 0x1ec   :  { %v93_v39 = vsub.f32 %v87_v37, %v92_v38 }
 0x1ee   :  { %v94_v40 = vmul.f32 %v113_v28, %v93_v39 }
 0x1f0   :  { %96 = vst.msk [vmem:[%s229_s2] sm:$0xff] %vm95_vm3, %v94_v40 }
 0x1f1   :  { %111 = vsyncpa [#allocation3], 1 }
 0x1f2   :  { %112 = vsyncpa [#allocation5], 1 }

</bundles_post_ra>
